<compile_context>
chip_gen: v7x
topology: tpu7x:2x2x1
jax: 0.10.0
libtpu: 0.0.40
codegen_flags: <defaults>
</compile_context>

<pallas_src>
import functools

import jax
import jax.numpy as jnp
from jax import lax
from jax.experimental import pallas as pl
from jax.experimental.pallas import tpu as pltpu


def _round_up(x, m):
    return (x + m - 1) // m * m


def _bi_triplet_kernel(rgb_ref, ir_ref, rgbsq_ref, irsq_ref, trgb_ref, tir_ref,
                       out_ref, acc_ref, *, margin, n_real):
    # rgb_ref  : (N, TK) mxu dtype        ir_ref : (N, TK) mxu dtype
    # rgbsq_ref: (N, 1)  f32 (+inf pads)  irsq_ref: (1, N) f32 (+inf pads)
    # trgb_ref : (1, N)  int32            tir_ref: (N, 1) int32
    # acc_ref  : (N, N)  f32 cross-product accumulator
    k = pl.program_id(0)
    kt = pl.num_programs(0)

    # Pure dot+accumulate inner loop: bf16 x bf16 -> f32 on the MXU,
    # contracting both operands on their last (lane) dim — no relayout.
    prod = lax.dot_general(
        rgb_ref[...], ir_ref[...], (((1,), (1,)), ((), ())),
        preferred_element_type=jnp.float32)                           # (N, N)

    @pl.when(k == 0)
    def _init():
        acc_ref[...] = prod

    @pl.when(k != 0)
    def _accum():
        acc_ref[...] += prod

    @pl.when(k == kt - 1)
    def _finalize():
        # dist_sq[i, j] = ||rgb_i||^2 + ||ir_j||^2 - 2 * rgb_i . ir_j
        # Padded rows/cols have +inf norms -> dist_sq = +inf there.
        dist_sq = rgbsq_ref[...] + irsq_ref[...] - 2.0 * acc_ref[...]

        # mask[i, j] = (t_rgb[j] == t_ir[i])  — matches the torch expand/.t().
        # Padded entries carry distinct negative sentinels (-1 / -2), so a pad
        # is never a "positive"; pads are excluded from negatives by +inf.
        mask = trgb_ref[...] == tir_ref[...]                          # (N, N)

        neg_inf = jnp.float32(-jnp.inf)
        pos_inf = jnp.float32(jnp.inf)
        masked_pos = jnp.where(mask, dist_sq, neg_inf)
        masked_neg = jnp.where(mask, pos_inf, dist_sq)

        # sqrt after the reductions (monotonic => equivalent); n^2 -> ~4n sqrts.
        # NOTE: an anchor with no positive falls back to sqrt(eps) instead of
        # the torch module's hard assumption/error (invalid batch).
        eps = jnp.float32(1e-12)
        rgb_ap = jnp.sqrt(jnp.maximum(
            jnp.max(masked_pos, axis=1, keepdims=True), eps))         # (N, 1)
        rgb_an = jnp.sqrt(jnp.maximum(
            jnp.min(masked_neg, axis=1, keepdims=True), eps))         # (N, 1)
        ir_ap = jnp.sqrt(jnp.maximum(
            jnp.max(masked_pos, axis=0, keepdims=True), eps))         # (1, N)
        ir_an = jnp.sqrt(jnp.maximum(
            jnp.min(masked_neg, axis=0, keepdims=True), eps))         # (1, N)

        # MarginRankingLoss(margin)(an, ap, y=1) = mean(relu(ap - an + margin)).
        # Padded anchors have an = +inf -> relu(-inf) = 0, so summing over N
        # and dividing by the real n gives the exact mean over real anchors.
        inv_n = jnp.float32(1.0 / n_real)
        loss_rgb = jnp.sum(jnp.maximum(rgb_ap - rgb_an + margin, 0.0),
                           axis=0, keepdims=True) * inv_n             # (1, 1)
        loss_ir = jnp.sum(jnp.maximum(ir_ap - ir_an + margin, 0.0),
                          axis=1, keepdims=True) * inv_n              # (1, 1)
        out_ref[...] = loss_rgb + loss_ir


def bi_batch_hard_triplet_loss(inputs, targets, margin=0.3,
                               mxu_dtype=jnp.bfloat16):
    """Pallas implementation of BiBatchHardTripletLoss.forward."""
    two_n, d = inputs.shape
    n = two_n // 2

    # --- pad to vreg-friendly shapes ------------------------------------
    N = _round_up(max(n, 1), 16)     # bf16 sublane packing ([16,128] per vreg)
    D = _round_up(d, 128)            # lane alignment
    itemsize = jnp.dtype(mxu_dtype).itemsize

    # --- per-generation VMEM ceiling -------------------------------------
    try:
        vmem_cap = int(pltpu.get_tpu_info().vmem_capacity_bytes)
    except Exception:                                 # pragma: no cover
        vmem_cap = 64 << 20                           # conservative (v7x/TC)
    vmem_ceiling = max(vmem_cap - (16 << 20), (vmem_cap * 3) // 4)

    def _vmem_bytes(tk):
        return (2 * 2 * N * tk * itemsize      # double-buffered rgb/ir tiles
                + 4 * 2 * N * 4                # norm + label vectors (db'd)
                + N * N * 4                    # (N,N) f32 accumulator scratch
                + 5 * N * N * 4)               # finalize (N,N) temps headroom

    # Largest feature tile that fits the ceiling; whole-D (kt == 1) preferred.
    candidates = [D] + [t for t in (4096, 2048, 1024, 512, 256, 128)
                        if t < D and D % t == 0]
    TK = candidates[-1]
    for t in candidates:
        if _vmem_bytes(t) <= vmem_ceiling:
            TK = t
            break
    kt = D // TK
    vmem_limit = int(min(max(_vmem_bytes(TK) + (4 << 20), 32 << 20),
                         vmem_ceiling))

    # --- pad + quantize inputs, hoist squared norms to the wrapper -------
    rgb_pad = jnp.zeros((N, D), jnp.float32).at[:n, :d].set(
        inputs[:n].astype(jnp.float32))
    ir_pad = jnp.zeros((N, D), jnp.float32).at[:n, :d].set(
        inputs[n:].astype(jnp.float32))
    rgb = rgb_pad.astype(mxu_dtype)                    # (N, D) MXU feed
    ir = ir_pad.astype(mxu_dtype)                      # (N, D) MXU feed

    rgb_f = rgb.astype(jnp.float32)
    ir_f = ir.astype(jnp.float32)
    rgbsq = jnp.sum(rgb_f * rgb_f, axis=1, keepdims=True)       # (N, 1)
    irsq = jnp.sum(ir_f * ir_f, axis=1, keepdims=True).T        # (1, N)
    # +inf on padded entries -> padded pairs excluded from the negative min
    # (and dist_sq stays well-defined: acc is 0 there, never inf - inf).
    rgbsq = rgbsq.at[n:, :].set(jnp.inf)
    irsq = irsq.at[:, n:].set(jnp.inf)

    # Distinct sentinel labels on pads (real labels assumed >= 0) so a padded
    # pair is never a "positive".
    t = targets.astype(jnp.int32)
    t_rgb = jnp.full((1, N), -1, dtype=jnp.int32).at[0, :n].set(t[:n])
    t_ir = jnp.full((N, 1), -2, dtype=jnp.int32).at[:n, 0].set(t[n:])

    grid_spec = pltpu.PrefetchScalarGridSpec(
        num_scalar_prefetch=0,
        grid=(kt,),
        in_specs=[
            pl.BlockSpec((N, TK), lambda k: (0, k)),   # rgb   tile over d
            pl.BlockSpec((N, TK), lambda k: (0, k)),   # ir    tile over d
            pl.BlockSpec((N, 1), lambda k: (0, 0)),    # ||rgb||^2
            pl.BlockSpec((1, N), lambda k: (0, 0)),    # ||ir||^2
            pl.BlockSpec((1, N), lambda k: (0, 0)),    # t_rgb
            pl.BlockSpec((N, 1), lambda k: (0, 0)),    # t_ir
        ],
        out_specs=pl.BlockSpec((1, 1), lambda k: (0, 0)),
        scratch_shapes=[
            pltpu.VMEM((N, N), jnp.float32),   # cross-product accumulator
        ],
    )

    out = pl.pallas_call(
        functools.partial(_bi_triplet_kernel, margin=float(margin), n_real=n),
        out_shape=jax.ShapeDtypeStruct((1, 1), jnp.float32),
        grid_spec=grid_spec,
        compiler_params=pltpu.CompilerParams(
            dimension_semantics=("arbitrary",),
            vmem_limit_bytes=vmem_limit),
    )(rgb, ir, rgbsq, irsq, t_rgb, t_ir)
    return out[0, 0]


def _reference_loss(inputs, targets, margin=0.3, mxu_dtype=jnp.bfloat16):
    """Pure-JAX reference mirroring the PyTorch forward (same quantized feed)."""
    n = inputs.shape[0] // 2
    rgb = inputs[:n].astype(mxu_dtype).astype(jnp.float32)
    ir = inputs[n:].astype(mxu_dtype).astype(jnp.float32)
    dist_sq = (jnp.sum(rgb ** 2, axis=1, keepdims=True)
               + jnp.sum(ir ** 2, axis=1, keepdims=True).T
               - 2.0 * jnp.dot(rgb, ir.T, precision=jax.lax.Precision.HIGHEST))
    dist = jnp.sqrt(jnp.clip(dist_sq, 1e-12))
    mask = targets[:n][None, :] == targets[n:][:, None]   # mask[i,j]=t_rgb[j]==t_ir[i]
    rgb_ap = jnp.max(jnp.where(mask, dist, -jnp.inf), axis=1)
    rgb_an = jnp.min(jnp.where(mask, jnp.inf, dist), axis=1)
    ir_ap = jnp.max(jnp.where(mask, dist, -jnp.inf), axis=0)
    ir_an = jnp.min(jnp.where(mask, jnp.inf, dist), axis=0)
    l1 = jnp.mean(jnp.maximum(rgb_ap - rgb_an + margin, 0.0))
    l2 = jnp.mean(jnp.maximum(ir_ap - ir_an + margin, 0.0))
    return l1 + l2


if __name__ == "__main__":
    key = jax.random.PRNGKey(0)
    n, d = 8, 32
    # 4 identities x 2 samples per modality -> every anchor has >=1 positive
    # and >=1 negative (the original module requires this).
    labels_half = jnp.array([0, 0, 1, 1, 2, 2, 3, 3], dtype=jnp.int32)
    targets = jnp.concatenate([labels_half, labels_half])            # (2n,)
    inputs = jax.random.normal(key, (2 * n, d), dtype=jnp.float32)   # (2n, d)

    loss = bi_batch_hard_triplet_loss(inputs, targets, margin=0.3)
    jax.block_until_ready(loss)

    ref = _reference_loss(inputs, targets, margin=0.3)
    assert jnp.allclose(loss, ref, atol=1e-4, rtol=1e-4), (loss, ref)

    print("KERNEL_OK")
</pallas_src>

<mosaic_0001>
module attributes {stable_mosaic.version = 11 : i64} {
  func.func @_bi_triplet_kernel(%arg0: i32, %arg1: memref<16x128xbf16, #tpu.memory_space<vmem>>, %arg2: memref<16x128xbf16, #tpu.memory_space<vmem>>, %arg3: memref<16x1xf32, #tpu.memory_space<vmem>>, %arg4: memref<1x16xf32, #tpu.memory_space<vmem>>, %arg5: memref<1x16xi32, #tpu.memory_space<vmem>>, %arg6: memref<16x1xi32, #tpu.memory_space<vmem>>, %arg7: memref<1x1xf32, #tpu.memory_space<vmem>>, %arg8: memref<16x16xf32, #tpu.memory_space<vmem>>) attributes {dimension_semantics = [#tpu.dimension_semantics<arbitrary>], iteration_bounds = array<i64: 1>, scalar_prefetch = 0 : i64, scratch_operands = 1 : i64, tpu.core_type = #tpu.core_type<tc>, window_params = [{transform_indices = @transform_0, window_bounds = array<i64: 16, 128>}, {transform_indices = @transform_1, window_bounds = array<i64: 16, 128>}, {pipeline_mode = #tpu.pipeline_mode<synchronous>, transform_indices = @transform_2, window_bounds = array<i64: 16, 1>}, {pipeline_mode = #tpu.pipeline_mode<synchronous>, transform_indices = @transform_3, window_bounds = array<i64: 1, 16>}, {pipeline_mode = #tpu.pipeline_mode<synchronous>, transform_indices = @transform_4, window_bounds = array<i64: 1, 16>}, {pipeline_mode = #tpu.pipeline_mode<synchronous>, transform_indices = @transform_5, window_bounds = array<i64: 16, 1>}, {pipeline_mode = #tpu.pipeline_mode<synchronous>, transform_indices = @transform_6, window_bounds = array<i64: 1, 1>}]} {
    %c0 = arith.constant 0 : index
    %c0_0 = arith.constant 0 : index
    %0 = vector.load %arg1[%c0, %c0_0] : memref<16x128xbf16, #tpu.memory_space<vmem>>, vector<16x128xbf16>
    %c0_1 = arith.constant 0 : index
    %c0_2 = arith.constant 0 : index
    %1 = vector.load %arg2[%c0_1, %c0_2] : memref<16x128xbf16, #tpu.memory_space<vmem>>, vector<16x128xbf16>
    %cst = arith.constant dense<0.000000e+00> : vector<16x16xf32>
    %2 = tpu.matmul %0, %1, %cst {dimension_numbers = #tpu.dot_dimension_numbers<[1], [1], [0], [0], [0, 0, 1, 0], [], []>} : vector<16x128xbf16>, vector<16x128xbf16>, vector<16x16xf32> -> vector<16x16xf32>
    %c0_i32 = arith.constant 0 : i32
    %3 = arith.cmpi eq, %arg0, %c0_i32 : i32
    %4 = arith.extui %3 : i1 to i32
    %c0_i32_3 = arith.constant 0 : i32
    %5 = arith.cmpi ne, %4, %c0_i32_3 : i32
    scf.if %5 {
      %c0_8 = arith.constant 0 : index
      %c0_9 = arith.constant 0 : index
      %12 = vector.load %arg8[%c0_8, %c0_9] : memref<16x16xf32, #tpu.memory_space<vmem>>, vector<16x16xf32>
      tpu.vector_store %arg8[%c0_8, %c0_9], %2 {strides = array<i32>} : memref<16x16xf32, #tpu.memory_space<vmem>>, vector<16x16xf32>,
    } else {
    }
    %c0_i32_4 = arith.constant 0 : i32
    %6 = arith.cmpi ne, %arg0, %c0_i32_4 : i32
    %7 = arith.extui %6 : i1 to i32
    %c0_i32_5 = arith.constant 0 : i32
    %8 = arith.cmpi ne, %7, %c0_i32_5 : i32
    scf.if %8 {
      %c0_8 = arith.constant 0 : index
      %c0_9 = arith.constant 0 : index
      %12 = vector.load %arg8[%c0_8, %c0_9] : memref<16x16xf32, #tpu.memory_space<vmem>>, vector<16x16xf32>
      %13 = arith.addf %12, %2 : vector<16x16xf32>
      %c0_10 = arith.constant 0 : index
      %c0_11 = arith.constant 0 : index
      %14 = vector.load %arg8[%c0_10, %c0_11] : memref<16x16xf32, #tpu.memory_space<vmem>>, vector<16x16xf32>
      tpu.vector_store %arg8[%c0_10, %c0_11], %13 {strides = array<i32>} : memref<16x16xf32, #tpu.memory_space<vmem>>, vector<16x16xf32>,
    } else {
    }
    %c0_i32_6 = arith.constant 0 : i32
    %9 = arith.cmpi eq, %arg0, %c0_i32_6 : i32
    %10 = arith.extui %9 : i1 to i32
    %c0_i32_7 = arith.constant 0 : i32
    %11 = arith.cmpi ne, %10, %c0_i32_7 : i32
    scf.if %11 {
      %c0_8 = arith.constant 0 : index
      %c0_9 = arith.constant 0 : index
      %12 = vector.load %arg3[%c0_8, %c0_9] : memref<16x1xf32, #tpu.memory_space<vmem>>, vector<16x1xf32>
      %c0_10 = arith.constant 0 : index
      %c0_11 = arith.constant 0 : index
      %13 = vector.load %arg4[%c0_10, %c0_11] : memref<1x16xf32, #tpu.memory_space<vmem>>, vector<1x16xf32>
      %14 = vector.broadcast %12 : vector<16x1xf32> to vector<16x16xf32>
      %15 = vector.broadcast %13 : vector<1x16xf32> to vector<16x16xf32>
      %16 = arith.addf %14, %15 : vector<16x16xf32>
      %c0_12 = arith.constant 0 : index
      %c0_13 = arith.constant 0 : index
      %17 = vector.load %arg8[%c0_12, %c0_13] : memref<16x16xf32, #tpu.memory_space<vmem>>, vector<16x16xf32>
      %cst_14 = arith.constant 2.000000e+00 : f32
      %18 = vector.broadcast %cst_14 : f32 to vector<16x16xf32>
      %19 = arith.mulf %18, %17 : vector<16x16xf32>
      %20 = arith.subf %16, %19 : vector<16x16xf32>
      %c0_15 = arith.constant 0 : index
      %c0_16 = arith.constant 0 : index
      %21 = vector.load %arg5[%c0_15, %c0_16] : memref<1x16xi32, #tpu.memory_space<vmem>>, vector<1x16xi32>
      %c0_17 = arith.constant 0 : index
      %c0_18 = arith.constant 0 : index
      %22 = vector.load %arg6[%c0_17, %c0_18] : memref<16x1xi32, #tpu.memory_space<vmem>>, vector<16x1xi32>
      %23 = vector.broadcast %21 : vector<1x16xi32> to vector<16x16xi32>
      %24 = vector.broadcast %22 : vector<16x1xi32> to vector<16x16xi32>
      %25 = arith.cmpi eq, %23, %24 : vector<16x16xi32>
      %cst_19 = arith.constant 0xFF800000 : f32
      %26 = vector.broadcast %cst_19 : f32 to vector<16x16xf32>
      %27 = arith.select %25, %20, %26 : vector<16x16xi1>, vector<16x16xf32>
      %cst_20 = arith.constant 0x7F800000 : f32
      %28 = vector.broadcast %cst_20 : f32 to vector<16x16xf32>
      %29 = arith.select %25, %28, %20 : vector<16x16xi1>, vector<16x16xf32>
      %cst_21 = arith.constant dense<0xFF800000> : vector<16xf32>
      %30 = vector.multi_reduction <maximumf>, %27, %cst_21 [1] : vector<16x16xf32> to vector<16xf32>
      %31 = vector.shape_cast %30 : vector<16xf32> to vector<16x1xf32>
      %cst_22 = arith.constant 9.99999996E-13 : f32
      %32 = vector.broadcast %cst_22 : f32 to vector<16x1xf32>
      %33 = arith.maximumf %31, %32 : vector<16x1xf32>
      %34 = math.sqrt %33 : vector<16x1xf32>
      %cst_23 = arith.constant dense<0x7F800000> : vector<16xf32>
      %35 = vector.multi_reduction <minimumf>, %29, %cst_23 [1] : vector<16x16xf32> to vector<16xf32>
      %36 = vector.shape_cast %35 : vector<16xf32> to vector<16x1xf32>
      %cst_24 = arith.constant 9.99999996E-13 : f32
      %37 = vector.broadcast %cst_24 : f32 to vector<16x1xf32>
      %38 = arith.maximumf %36, %37 : vector<16x1xf32>
      %39 = math.sqrt %38 : vector<16x1xf32>
      %cst_25 = arith.constant dense<0xFF800000> : vector<16xf32>
      %40 = vector.multi_reduction <maximumf>, %27, %cst_25 [0] : vector<16x16xf32> to vector<16xf32>
      %41 = vector.shape_cast %40 : vector<16xf32> to vector<1x16xf32>
      %cst_26 = arith.constant 9.99999996E-13 : f32
      %42 = vector.broadcast %cst_26 : f32 to vector<1x16xf32>
      %43 = arith.maximumf %41, %42 : vector<1x16xf32>
      %44 = math.sqrt %43 : vector<1x16xf32>
      %cst_27 = arith.constant dense<0x7F800000> : vector<16xf32>
      %45 = vector.multi_reduction <minimumf>, %29, %cst_27 [0] : vector<16x16xf32> to vector<16xf32>
      %46 = vector.shape_cast %45 : vector<16xf32> to vector<1x16xf32>
      %cst_28 = arith.constant 9.99999996E-13 : f32
      %47 = vector.broadcast %cst_28 : f32 to vector<1x16xf32>
      %48 = arith.maximumf %46, %47 : vector<1x16xf32>
      %49 = math.sqrt %48 : vector<1x16xf32>
      %50 = arith.subf %34, %39 : vector<16x1xf32>
      %cst_29 = arith.constant 3.000000e-01 : f32
      %51 = vector.broadcast %cst_29 : f32 to vector<16x1xf32>
      %52 = arith.addf %50, %51 : vector<16x1xf32>
      %cst_30 = arith.constant 0.000000e+00 : f32
      %53 = vector.broadcast %cst_30 : f32 to vector<16x1xf32>
      %54 = arith.maximumf %52, %53 : vector<16x1xf32>
      %cst_31 = arith.constant dense<0.000000e+00> : vector<1xf32>
      %55 = vector.multi_reduction <add>, %54, %cst_31 [0] : vector<16x1xf32> to vector<1xf32>
      %56 = vector.shape_cast %55 : vector<1xf32> to vector<1x1xf32>
      %cst_32 = arith.constant 1.250000e-01 : f32
      %57 = vector.broadcast %cst_32 : f32 to vector<1x1xf32>
      %58 = arith.mulf %56, %57 : vector<1x1xf32>
      %59 = arith.subf %44, %49 : vector<1x16xf32>
      %cst_33 = arith.constant 3.000000e-01 : f32
      %60 = vector.broadcast %cst_33 : f32 to vector<1x16xf32>
      %61 = arith.addf %59, %60 : vector<1x16xf32>
      %cst_34 = arith.constant 0.000000e+00 : f32
      %62 = vector.broadcast %cst_34 : f32 to vector<1x16xf32>
      %63 = arith.maximumf %61, %62 : vector<1x16xf32>
      %cst_35 = arith.constant dense<0.000000e+00> : vector<1xf32>
      %64 = vector.multi_reduction <add>, %63, %cst_35 [1] : vector<1x16xf32> to vector<1xf32>
      %65 = vector.shape_cast %64 : vector<1xf32> to vector<1x1xf32>
      %cst_36 = arith.constant 1.250000e-01 : f32
      %66 = vector.broadcast %cst_36 : f32 to vector<1x1xf32>
      %67 = arith.mulf %65, %66 : vector<1x1xf32>
      %68 = arith.addf %58, %67 : vector<1x1xf32>
      %c0_37 = arith.constant 0 : index
      %c0_38 = arith.constant 0 : index
      %69 = vector.load %arg7[%c0_37, %c0_38] : memref<1x1xf32, #tpu.memory_space<vmem>>, vector<1x1xf32>
      tpu.vector_store %arg7[%c0_37, %c0_38], %68 {strides = array<i32>} : memref<1x1xf32, #tpu.memory_space<vmem>>, vector<1x1xf32>,
    } else {
    }
    return
  }
  func.func @transform_0(%arg0: i32) -> (i32, i32) {
    %c0_i32 = arith.constant 0 : i32
    %c0_i32_0 = arith.constant 0 : i32
    return %c0_i32, %arg0 : i32, i32
  }
  func.func @transform_1(%arg0: i32) -> (i32, i32) {
    %c0_i32 = arith.constant 0 : i32
    %c0_i32_0 = arith.constant 0 : i32
    return %c0_i32, %arg0 : i32, i32
  }
  func.func @transform_2(%arg0: i32) -> (i32, i32) {
    %c0_i32 = arith.constant 0 : i32
    %c0_i32_0 = arith.constant 0 : i32
    %c0_i32_1 = arith.constant 0 : i32
    return %c0_i32, %c0_i32_0 : i32, i32
  }
  func.func @transform_3(%arg0: i32) -> (i32, i32) {
    %c0_i32 = arith.constant 0 : i32
    %c0_i32_0 = arith.constant 0 : i32
    %c0_i32_1 = arith.constant 0 : i32
    return %c0_i32, %c0_i32_0 : i32, i32
  }
  func.func @transform_4(%arg0: i32) -> (i32, i32) {
    %c0_i32 = arith.constant 0 : i32
    %c0_i32_0 = arith.constant 0 : i32
    %c0_i32_1 = arith.constant 0 : i32
    return %c0_i32, %c0_i32_0 : i32, i32
  }
  func.func @transform_5(%arg0: i32) -> (i32, i32) {
    %c0_i32 = arith.constant 0 : i32
    %c0_i32_0 = arith.constant 0 : i32
    %c0_i32_1 = arith.constant 0 : i32
    return %c0_i32, %c0_i32_0 : i32, i32
  }
  func.func @transform_6(%arg0: i32) -> (i32, i32) {
    %c0_i32 = arith.constant 0 : i32
    %c0_i32_0 = arith.constant 0 : i32
    %c0_i32_1 = arith.constant 0 : i32
    return %c0_i32, %c0_i32_0 : i32, i32
  }
}

</mosaic_0001>

<bundles_post_ra>
// kernel: tpu_custom_call.1
= control target key start
LH: loop header
LB: loop body
LE: loop exit
PB: predicated region body
PF: predicated region fallthrough
CT: control target
= control target key end

     0   :  { %v318_v1 = vmov 0.0   ;;  %vm319_vm0 = vmmov 0   ;;  %v320_v4 = vmov 0   ;;  %s400_s0 = inlined_call_operand.vmem [shape: bf16[16,128], index: 0, kind: input, shape index: {}]   ;;  %s401_s1 = inlined_call_operand.vmem [shape: bf16[16,128], index: 1, kind: input, shape index: {}]   ;;  %s402_s2 = inlined_call_operand.vmem [shape: f32[16,1], index: 2, kind: input, shape index: {}]   ;;  %s403_s3 = inlined_call_operand.vmem [shape: f32[1,16], index: 3, kind: input, shape index: {}]   ;;  %s404_s4 = inlined_call_operand.vmem [shape: s32[1,16], index: 4, kind: input, shape index: {}]   ;;  %s405_s5 = inlined_call_operand.vmem [shape: s32[16,1], index: 5, kind: input, shape index: {}]   ;;  %s406_s6 = inlined_call_operand.hbm [shape: f32[1,1], index: 6, kind: output, shape index: {}]  }
   0x1   :  { %v280_v0 = vld [vmem:[%s401_s1] sm:$0xff]   ;;  %268 = vmatprep.subr.bf16.mxu0 %v318_v1  ;;  %270 = vmatprep.mubr.msk.bf16.mxu0 %vm319_vm0, %v318_v1 }
   0x2   :  { %269 = vmatpush3.bf16.xpose.msra.mxu0 %v280_v0  ;;  %v103_v2 = vld [vmem:[%s402_s2] sm:$0xff]  ;;  %278 = vset.pattern.permute.xlu0 %v320_v4 }
   0x3   :  { %v131_v3 = vld [vmem:[%s405_s5] sm:$0xff]  ;;  %279 = vset.pattern.permute.xlu1 %v320_v4 }
   0x4   :  { %11 = vsyncpa [#allocation4], 0  ;;  %108 = vperm.xlu0 %278, %v103_v2   ;;  %138 = vperm.xlu1 %279, %v131_v3   ;;  %v281_v5 = vld [vmem:[%s400_s0] sm:$0xff]   ;;  %v104_v6 = vld [vmem:[%s402_s2 + $0x8] sm:$0xff]  ;;  %vm86_vm1 = vcmask 130048   ;;  %vm246_vm0 = vcmask 0  }
   0x5   :  { %v132_v7 = vld [vmem:[%s405_s5 + $0x8] sm:$0xff]  ;;  %v264_v13 = vld [vmem:[%s403_s3] ss:$0 sm:$0xff]  ;;  %s321_s3 = smov [#allocation3]  }
   0x6   :  { %v265_v16 = vld [vmem:[%s404_s4] ss:$0 sm:$0xff]  ;;  %s254_s4 = sshll.u32 %s321_s3, 4  ;;  %s255_s4 = int_to_ptr.vmem [resolvable:$true] %s254_s4 }
   0x7   :  { %s294_s9 = scalar_lea.vmem %s255_s4, 16  ;;  %s298_s10 = scalar_lea.vmem %s255_s4, 32 }
   0x8   :  { %113 = vperm.xlu0 %278, %v104_v6   ;;  %141 = vperm.xlu1 %279, %v132_v7   ;;  %p295_p0 = scmp.ne.s32.totalorder %s255_s4, %s294_s9  ;;  %p299_p1 = scmp.lt.s32.totalorder %s255_s4, %s255_s4 }
   0x9   :  { %271 = vmatmul.mubr.bf16.vlgmr.msra.gmra.mrb[0].mxu0 %v281_v5  ;;  %p300_p2 = scmp.lt.s32.totalorder %s298_s10, %s294_s9 }
   0xb   :  { %p301_p3 = por %p300_p2, %p299_p1 }
   0xd   :  { %p302_p4 = pnand %p301_p3, %p295_p0 }
  0x83   :  { %v109_v11 = vpop.permute.xlu0 %108  ;;  %v139_v14 = vpop.permute.xlu1 %138 }
  0x84   :  { %v122_v15 = vadd.f32 %v264_v13, %v109_v11  ;;  %vm143_vm2 = vcmp.eq.s32.totalorder %v265_v16, %v139_v14 }
  0x87   :  { %v114_v18 = vpop.permute.xlu0 %113  ;;  %v142_v24 = vpop.permute.xlu1 %141 }
  0x88   :  { %v123_v22 = vadd.f32 %v264_v13, %v114_v18  ;;  %vm144_vm3 = vcmp.eq.s32.totalorder %v265_v16, %v142_v24 }
  0xdc   :  { %v75_v8 = vpop.f32.mrb[0].mxu0 }
  0xdd   :  { %87 = vst.msk [vmem:[#allocation2] sm:$0xff] %vm86_vm1, %v75_v8  ;;  %v272_v9 = vpop.f32.mrb[1].mxu0 }
  0xde   :  { %v78_v10 = vpop.f32.mrb[2].mxu0 }
  0xdf   :  { %88 = vst.msk [vmem:[#allocation2 + $0x8] sm:$0xff] %vm86_vm1, %v78_v10  ;;  %v273_v12 = vpop.f32.mrb[3].mxu0 }
  0xe4   :  { %v124_v17 = vld [vmem:[#allocation2] sm:$0xff] }
  0xe5   :  { %v126_v19 = vmul.f32 2.0, %v124_v17 }
  0xe6   :  { %v125_v20 = vld [vmem:[#allocation2 + $0x8] sm:$0xff] }
  0xe7   :  { %v128_v21 = vsub.f32 %v122_v15, %v126_v19  ;;  %v127_v23 = vmul.f32 2.0, %v125_v20 }
  0xe9   :  { %v129_v25 = vsub.f32 %v123_v22, %v127_v23  ;;  %v145_v26 = vsel %vm143_vm2, %v128_v21, -inf  ;;  %v147_v27 = vsel %vm143_vm2, inf, %v128_v21 }
  0xea   :  { %v150_v28 = vsel %vm86_vm1, %v145_v26, -inf  ;;  %v172_v32 = vsel %vm86_vm1, %v147_v27, inf }
  0xeb   :  { %151 = vmax.xlane.f32.xlu0 %v150_v28  ;;  %v146_v29 = vsel %vm144_vm3, %v129_v25, -inf  ;;  %v148_v30 = vsel %vm144_vm3, inf, %v129_v25 }
  0xec   :  { %v153_v31 = vsel %vm86_vm1, %v146_v29, -inf  ;;  %v175_v33 = vsel %vm86_vm1, %v148_v30, inf }
  0xed   :  { %154 = vmax.xlane.f32.xlu1 %v153_v31  ;;  %v194_v34 = vmax.f32 %v150_v28, %v153_v31  ;;  %v209_v35 = vmin.f32 %v172_v32, %v175_v33 }
  0xef   :  { %v195_v36 = vrot.slane %v194_v34, 4  ;;  %173 = vmin.xlane.f32.xlu0 %v172_v32  ;;  %v210_v37 = vrot.slane %v209_v35, 4 }
  0xf1   :  { %v196_v38 = vmax.f32 %v194_v34, %v195_v36  ;;  %v211_v39 = vmin.f32 %v209_v35, %v210_v37 }
  0xf3   :  { %v197_v40 = vrot.slane %v196_v38, 2  ;;  %176 = vmin.xlane.f32.xlu0 %v175_v33  ;;  %v212_v41 = vrot.slane %v211_v39, 2 }
  0xf5   :  { %v198_v42 = vmax.f32 %v196_v38, %v197_v40  ;;  %v213_v43 = vmin.f32 %v211_v39, %v212_v41 }
  0xf7   :  { %v199_v44 = vrot.slane %v198_v42, 1  ;;  %v214_v45 = vrot.slane %v213_v43, 1 }
  0xf9   :  { %v200_v46 = vmax.f32 %v198_v42, %v199_v44  ;;  %v215_v47 = vmin.f32 %v213_v43, %v214_v45 }
  0xfb   :  { %v201_v48 = vmax.f32 %v200_v46, 1e-12  ;;  %v216_v49 = vmax.f32 %v215_v47, 1e-12 }
  0xfd   :  { %282 = vrsqrt.f32 %v201_v48  ;;  %vm204_vm4 = vcmp.eq.f32.partialorder %v201_v48, inf  ;;  %v207_v53 = vand.u32 2147483648, %v201_v48  ;;  %vm206_vm5 = vcmp.eq.f32.partialorder %v201_v48, 0.0 }
  0xfe   :  { %284 = vrsqrt.f32 %v216_v49  ;;  %vm219_vm6 = vcmp.eq.f32.partialorder %v216_v49, inf  ;;  %v222_v56 = vand.u32 2147483648, %v216_v49  ;;  %vm221_vm7 = vcmp.eq.f32.partialorder %v216_v49, 0.0 }
 0x107   :  { %v283_v50 = vpop.eup %282 }
 0x108   :  { %v285_v51 = vpop.eup %284  ;;  %v203_v52 = vmul.f32 %v283_v50, %v201_v48 }
 0x109   :  { %v218_v54 = vmul.f32 %v285_v51, %v216_v49 }
 0x10a   :  { %v205_v55 = vsel %vm204_vm4, %v201_v48, %v203_v52 }
 0x10b   :  { %v208_v57 = vsel %vm206_vm5, %v207_v53, %v205_v55  ;;  %v220_v58 = vsel %vm219_vm6, %v216_v49, %v218_v54 }
 0x10c   :  { %v223_v59 = vsel %vm221_vm7, %v222_v56, %v220_v58 }
 0x10d   :  { %v238_v60 = vsub.f32 %v208_v57, %v223_v59 }
 0x10f   :  { %v239_v61 = vadd.f32 0.3, %v238_v60 }
 0x111   :  { %v240_v62 = vmax.f32 %v239_v61, 0.0 }
 0x113   :  { %v241_v63 = vsel %vm86_vm1, %v240_v62, 0.0 }
 0x114   :  { %242 = vadd.xlane.f32.xlu1 %v241_v63 }
 0x178   :  { %v152_v0 = vpop.xlane.xlu0 %151 }
 0x179   :  { %v156_v1 = vmax.f32 %v152_v0, 1e-12 }
 0x17a   :  { %v155_v2 = vpop.xlane.xlu1 %154 }
 0x17b   :  { %286 = vrsqrt.f32 %v156_v1  ;;  %v157_v3 = vmax.f32 %v155_v2, 1e-12  ;;  %vm160_vm8 = vcmp.eq.f32.partialorder %v156_v1, inf  ;;  %v163_v15 = vand.u32 2147483648, %v156_v1 }
 0x17c   :  { %v174_v4 = vpop.xlane.xlu0 %173  ;;  %vm162_vm10 = vcmp.eq.f32.partialorder %v156_v1, 0.0 }
 0x17d   :  { %288 = vrsqrt.f32 %v157_v3  ;;  %v178_v5 = vmax.f32 %v174_v4, 1e-12  ;;  %vm167_vm12 = vcmp.eq.f32.partialorder %v157_v3, inf  ;;  %v170_v24 = vand.u32 2147483648, %v157_v3 }
 0x17e   :  { %vm169_vm14 = vcmp.eq.f32.partialorder %v157_v3, 0.0 }
 0x17f   :  { %290 = vrsqrt.f32 %v178_v5  ;;  %vm182_vm9 = vcmp.eq.f32.partialorder %v178_v5, inf  ;;  %v185_v16 = vand.u32 2147483648, %v178_v5  ;;  %vm184_vm11 = vcmp.eq.f32.partialorder %v178_v5, 0.0 }
 0x180   :  { %v177_v6 = vpop.xlane.xlu0 %176 }
 0x181   :  { %v179_v7 = vmax.f32 %v177_v6, 1e-12 }
 0x183   :  { %292 = vrsqrt.f32 %v179_v7  ;;  %vm189_vm13 = vcmp.eq.f32.partialorder %v179_v7, inf  ;;  %v192_v25 = vand.u32 2147483648, %v179_v7  ;;  %vm191_vm15 = vcmp.eq.f32.partialorder %v179_v7, 0.0 }
 0x185   :  { %v287_v8 = vpop.eup %286 }
 0x186   :  { %v159_v9 = vmul.f32 %v287_v8, %v156_v1 }
 0x187   :  { %v289_v10 = vpop.eup %288 }
 0x188   :  { %v166_v12 = vmul.f32 %v289_v10, %v157_v3  ;;  %v161_v14 = vsel %vm160_vm8, %v156_v1, %v159_v9 }
 0x189   :  { %v291_v11 = vpop.eup %290  ;;  %v164_v19 = vsel %vm162_vm10, %v163_v15, %v161_v14 }
 0x18a   :  { %v181_v13 = vmul.f32 %v291_v11, %v178_v5  ;;  %v168_v22 = vsel %vm167_vm12, %v157_v3, %v166_v12 }
 0x18b   :  { %v171_v27 = vsel %vm169_vm14, %v170_v24, %v168_v22 }
 0x18c   :  { %v183_v17 = vsel %vm182_vm9, %v178_v5, %v181_v13 }
 0x18d   :  { %v293_v18 = vpop.eup %292  ;;  %v186_v20 = vsel %vm184_vm11, %v185_v16, %v183_v17 }
 0x18e   :  { %v188_v21 = vmul.f32 %v293_v18, %v179_v7  ;;  %v224_v23 = vsub.f32 %v164_v19, %v186_v20 }
 0x190   :  { %v190_v26 = vsel %vm189_vm13, %v179_v7, %v188_v21  ;;  %v226_v30 = vadd.f32 0.3, %v224_v23 }
 0x191   :  { %v193_v28 = vsel %vm191_vm15, %v192_v25, %v190_v26 }
 0x192   :  { %v225_v29 = vsub.f32 %v171_v27, %v193_v28  ;;  %v228_v32 = vmax.f32 %v226_v30, 0.0 }
 0x194   :  { %v227_v31 = vadd.f32 0.3, %v225_v29 }
 0x196   :  { %v229_v33 = vmax.f32 %v227_v31, 0.0 }
 0x198   :  { %v230_v34 = vadd.f32 %v229_v33, %v228_v32 }
 0x19a   :  { %v231_v35 = vrot.slane %v230_v34, 4 }
 0x19c   :  { %v232_v36 = vadd.f32 %v231_v35, %v230_v34 }
 0x19e   :  { %v233_v37 = vrot.slane %v232_v36, 2 }
 0x1a0   :  { %v234_v38 = vadd.f32 %v233_v37, %v232_v36 }
 0x1a1   :  { %v243_v40 = vpop.xlane.xlu1 %242 }
 0x1a2   :  { %v235_v39 = vrot.slane %v234_v38, 1  ;;  %v244_v43 = vmul.f32 0.125, %v243_v40 }
 0x1a4   :  { %v236_v41 = vadd.f32 %v235_v39, %v234_v38 }
 0x1a6   :  { %v237_v42 = vmul.f32 0.125, %v236_v41 }
 0x1a8   :  { %v245_v44 = vadd.f32 %v244_v43, %v237_v42 }
 0x1aa   :  { %247 = vst.msk [vmem:[#allocation3] sm:$0x1] %vm246_vm0, %v245_v44 }
 0x1ab   :  { %305 = shalt.err (!%p302_p4)
}
 0x1ac   :  { %s306_s13 = scalar_lea.hbm %s406_s6, 16 }
 0x1ad   :  { %p307_p5 = scmp.ne.s32.totalorder %s406_s6, %s306_s13  ;;  %p310_p6 = scmp.lt.u32.totalorder %s306_s13, %s406_s6 }
 0x1af   :  { %p312_p7 = pnand %p310_p6, %p307_p5 }
 0x1b1   :  { %315 = shalt.err (!%p312_p7)
}
 0x1b2   :  { %257 = dma.vmem_to_hbm [thread:$0]  %s255_s4, 16, %s406_s6, [#allocation4]  }
 0x1b3   :  { %316 = dma.done.wait [#allocation4], 16  }
 0x1b4   :  { %317 = vsyncadd [#allocation4], 4294967280 }
 0x1b5   :  { %261 = vsyncpa [#allocation4], 1 }

</bundles_post_ra>
